<compile_context>
chip_gen: v7x
topology: tpu7x:2x2x1
jax: 0.10.0
libtpu: 0.0.40
codegen_flags: <defaults>
</compile_context>

<pallas_src>
import jax
import jax.numpy as jnp
from jax import lax
from jax.experimental import pallas as pl
from jax.experimental.pallas import tpu as pltpu


def _round_up(x, m):
    return ((x + m - 1) // m) * m


def _conv3x3_s2_relu_kernel(xm_ref, xh_ref, w_ref, b_ref, o_ref):
    """One batch element x one strip of output rows.

    xm_ref: (1, TH, 2, Wq, 2*Cin)  main strip of input row-pairs (bf16)
    xh_ref: (1, 1,  2, Wq, 2*Cin)  one-row-pair halo below the strip (bf16)
    w_ref : (6, 2*Cin, nf)         per-tap weights (bf16), tap = kh*2 + colpair
    b_ref : (1, nf)                bias (f32)
    o_ref : (1, TH, Wout, nf)      output strip, NHWC (f32)
    """
    th = xm_ref.shape[1]
    c2 = xm_ref.shape[4]
    wout = o_ref.shape[2]
    nf = o_ref.shape[3]

    main = xm_ref[...][0]                              # (TH, 2, Wq, C2)
    halo = xh_ref[...][0]                              # (1,  2, Wq, C2)
    strip = jnp.concatenate([main, halo], axis=0)      # (TH+1, 2, Wq, C2)

    # Padded input row for output row r and tap kh is 2*r + kh:
    #   kh=0 -> row-pair r,   phase 0
    #   kh=1 -> row-pair r,   phase 1
    #   kh=2 -> row-pair r+1, phase 0  (needs the halo for the last r)
    acc = jnp.zeros((th * wout, nf), dtype=jnp.float32)
    tap = 0
    for row_off, phase in ((0, 0), (0, 1), (1, 0)):      # kh = 0, 1, 2
        rows = strip[row_off:row_off + th, phase, :, :]  # (TH, Wq, C2)
        # Column pair q=c holds padded cols (2c, 2c+1) = kw 0,1;
        # q=c+1 holds (2c+2, 2c+3) = kw 2 plus a phantom kw=3 (zero weights).
        for col_off in (0, 1):
            patch = rows[:, col_off:col_off + wout, :]   # (TH, Wout, C2)
            acc += jnp.dot(patch.reshape(th * wout, c2),
                           w_ref[tap],
                           preferred_element_type=jnp.float32)
            tap += 1

    acc = jnp.maximum(acc + b_ref[...], 0.0)
    o_ref[...] = acc.reshape(1, th, wout, nf).astype(o_ref.dtype)


def _pick_strip_rows(hout, wout, wq, c2, nf, n_batch, in_bytes,
                     target_rows=1024, vmem_budget_bytes=24 * 1024 * 1024):
    """Output rows per grid step: large M tile, capped by a v7x-safe VMEM budget."""
    def step_bytes(th):
        # double-buffered input strip + output strip (lane/sublane-padded est.)
        in_blk = th * 2 * _round_up(wq, 16) * _round_up(c2, 128) * in_bytes
        out_blk = th * _round_up(wout, 8) * _round_up(nf, 128) * 4
        return 2 * (in_blk + out_blk)

    th = max(1, min(hout, max(1, target_rows // max(wout, 1))))
    while th > 1 and step_bytes(th) > vmem_budget_bytes:
        th = (th + 1) // 2
    # v7x has two TensorCores: keep at least 2 "parallel" grid steps.
    if n_batch == 1 and th >= hout and hout > 1:
        th = (hout + 1) // 2
    return th


def conv_layer_forward(x_nchw, weight, bias, *, compute_dtype=jnp.bfloat16):
    """ConvLayer.forward: relu(conv2d(x, weight, bias, stride=2, padding=1)).

    x_nchw: (N, Cin, H, W); weight: (nf, Cin, 3, 3) (PyTorch layout); bias: (nf,).
    Returns (N, nf, Hout, Wout) float32.
    """
    N, Cin, H, W = x_nchw.shape
    nf = weight.shape[0]
    stride, pad, ks = 2, 1, 3
    Hout = (H + 2 * pad - ks) // stride + 1
    Wout = (W + 2 * pad - ks) // stride + 1

    C2 = 2 * Cin              # column-pair packed channels (kw phase x Cin)
    Wq = Wout + 1             # column pairs, incl. one right halo/pad pair
    in_bytes = jnp.dtype(compute_dtype).itemsize

    TH = _pick_strip_rows(Hout, Wout, Wq, C2, nf, N, in_bytes)
    num_strips = pl.cdiv(Hout, TH)
    Hout_pad = TH * num_strips
    Hq_tot = Hout_pad + 1     # row pairs, incl. the halo pair for the last strip

    # ---- glue (one fused XLA pass): NCHW -> NHWC, bf16 cast, zero-pad; the
    # column-pair repack below is a pure (free) reshape of the padded array.
    x = jnp.transpose(x_nchw, (0, 2, 3, 1)).astype(compute_dtype)
    pad_bottom = 2 * Hq_tot - 1 - H
    pad_right = 2 * Wq - 1 - W
    x_pad = jnp.pad(x, ((0, 0), (1, pad_bottom), (1, pad_right), (0, 0)))
    x_q = x_pad.reshape(N, Hq_tot, 2, Wq, C2)

    # Weights: (nf, Cin, 3, 3) -> (kh, kw, Cin, nf), pad kw 3->4 with a zero
    # "phantom" tap, then pack as (6, 2*Cin, nf) with tap = kh*2 + column-pair.
    w_t = jnp.transpose(weight, (2, 3, 1, 0))
    w_t = jnp.pad(w_t, ((0, 0), (0, 1), (0, 0), (0, 0)))
    w_taps = w_t.reshape(3, 2, C2, nf).reshape(6, C2, nf).astype(compute_dtype)
    b_row = bias.reshape(1, nf).astype(jnp.float32)

    cost = pl.CostEstimate(
        flops=2 * N * Hout_pad * Wout * 6 * C2 * nf,
        transcendentals=0,
        bytes_accessed=(N * Hq_tot * 2 * Wq * C2 * in_bytes
                        + 6 * C2 * nf * in_bytes
                        + nf * 4
                        + N * Hout_pad * Wout * nf * 4),
    )

    out = pl.pallas_call(
        _conv3x3_s2_relu_kernel,
        out_shape=jax.ShapeDtypeStruct((N, Hout_pad, Wout, nf), jnp.float32),
        grid=(N, num_strips),
        in_specs=[
            # main strip: TH input row-pairs, streamed / double-buffered
            pl.BlockSpec((1, TH, 2, Wq, C2), lambda n, i: (n, i, 0, 0, 0)),
            # one-row-pair halo just below the strip (re-reads 1/TH of rows)
            pl.BlockSpec((1, 1, 2, Wq, C2),
                         lambda n, i: (n, (i + 1) * TH, 0, 0, 0)),
            # weights / bias: constant index map -> DMA'd once, VMEM-resident
            pl.BlockSpec((6, C2, nf), lambda n, i: (0, 0, 0)),
            pl.BlockSpec((1, nf), lambda n, i: (0, 0)),
        ],
        out_specs=pl.BlockSpec((1, TH, Wout, nf), lambda n, i: (n, i, 0, 0)),
        compiler_params=pltpu.CompilerParams(
            dimension_semantics=("parallel", "parallel"),
            vmem_limit_bytes=48 * 1024 * 1024,
        ),
        cost_estimate=cost,
    )(x_q, x_q, w_taps, b_row)

    # Strip padded output rows, back to PyTorch NCHW (real-sized data only).
    out = out[:, :Hout]
    return jnp.transpose(out, (0, 3, 1, 2))


def _reference(x_nchw, weight, bias):
    y = lax.conv_general_dilated(
        x_nchw, weight,
        window_strides=(2, 2),
        padding=((1, 1), (1, 1)),
        dimension_numbers=("NCHW", "OIHW", "NCHW"),
    )
    return jnp.maximum(y + bias.reshape(1, -1, 1, 1), 0.0)


if __name__ == "__main__":
    ni, nf = 4, 8
    N, H, W = 2, 16, 16

    key = jax.random.PRNGKey(0)
    kx, kw, kb = jax.random.split(key, 3)
    x = jax.random.normal(kx, (N, ni, H, W), dtype=jnp.float32)
    fan_in = ni * 3 * 3
    weight = jax.random.normal(kw, (nf, ni, 3, 3), dtype=jnp.float32) / jnp.sqrt(fan_in)
    bias = jax.random.normal(kb, (nf,), dtype=jnp.float32) * 0.01

    fwd = jax.jit(conv_layer_forward)
    out = jax.block_until_ready(fwd(x, weight, bias))
    ref = jax.block_until_ready(_reference(x, weight, bias))

    assert out.shape == (N, nf, H // 2, W // 2)
    # bf16 operands with f32 accumulation -> loosened tolerance vs f32 reference.
    assert jnp.allclose(out, ref, atol=5e-2, rtol=5e-2), \
        float(jnp.max(jnp.abs(out - ref)))
    print("KERNEL_OK")
</pallas_src>

<mosaic_0001>
module attributes {stable_mosaic.version = 11 : i64} {
  func.func @_conv3x3_s2_relu_kernel(%arg0: i32, %arg1: i32, %arg2: memref<1x8x2x9x8xbf16, #tpu.memory_space<vmem>>, %arg3: memref<1x1x2x9x8xbf16, #tpu.memory_space<vmem>>, %arg4: memref<6x8x8xbf16, #tpu.memory_space<vmem>>, %arg5: memref<1x8xf32, #tpu.memory_space<vmem>>, %arg6: memref<1x8x8x8xf32, #tpu.memory_space<vmem>>) attributes {dimension_semantics = [#tpu.dimension_semantics<parallel>, #tpu.dimension_semantics<parallel>], iteration_bounds = array<i64: 2, 1>, scalar_prefetch = 0 : i64, scratch_operands = 0 : i64, tpu.core_type = #tpu.core_type<tc>, window_params = [{transform_indices = @transform_0, window_bounds = array<i64: 1, 8, 2, 9, 8>}, {transform_indices = @transform_1, window_bounds = array<i64: 1, 1, 2, 9, 8>}, {pipeline_mode = #tpu.pipeline_mode<synchronous>, transform_indices = @transform_2, window_bounds = array<i64: 6, 8, 8>}, {pipeline_mode = #tpu.pipeline_mode<synchronous>, transform_indices = @transform_3, window_bounds = array<i64: 1, 8>}, {transform_indices = @transform_4, window_bounds = array<i64: 1, 8, 8, 8>}]} {
    %c0 = arith.constant 0 : index
    %c0_0 = arith.constant 0 : index
    %c0_1 = arith.constant 0 : index
    %c0_2 = arith.constant 0 : index
    %c0_3 = arith.constant 0 : index
    %0 = vector.load %arg2[%c0, %c0_0, %c0_1, %c0_2, %c0_3] : memref<1x8x2x9x8xbf16, #tpu.memory_space<vmem>>, vector<1x8x2x9x8xbf16>
    %1 = vector.shape_cast %0 : vector<1x8x2x9x8xbf16> to vector<8x2x9x8xbf16>
    %c0_4 = arith.constant 0 : index
    %c0_5 = arith.constant 0 : index
    %c0_6 = arith.constant 0 : index
    %c0_7 = arith.constant 0 : index
    %c0_8 = arith.constant 0 : index
    %2 = vector.load %arg3[%c0_4, %c0_5, %c0_6, %c0_7, %c0_8] : memref<1x1x2x9x8xbf16, #tpu.memory_space<vmem>>, vector<1x1x2x9x8xbf16>
    %3 = vector.shape_cast %2 : vector<1x1x2x9x8xbf16> to vector<1x2x9x8xbf16>
    %4 = tpu.concatenate %1, %3 in 0 : vector<8x2x9x8xbf16>, vector<1x2x9x8xbf16> -> vector<9x2x9x8xbf16>
    %cst = arith.constant 0.000000e+00 : f32
    %5 = vector.broadcast %cst : f32 to vector<64x8xf32>
    %6 = vector.extract_strided_slice %4 {offsets = [0, 0, 0, 0], sizes = [8, 1, 9, 8], strides = [1, 1, 1, 1]} : vector<9x2x9x8xbf16> to vector<8x1x9x8xbf16>
    %7 = vector.shape_cast %6 : vector<8x1x9x8xbf16> to vector<8x9x8xbf16>
    %8 = vector.extract_strided_slice %7 {offsets = [0, 0, 0], sizes = [8, 8, 8], strides = [1, 1, 1]} : vector<8x9x8xbf16> to vector<8x8x8xbf16>
    %9 = vector.shape_cast %8 : vector<8x8x8xbf16> to vector<64x8xbf16>
    %c0_9 = arith.constant 0 : index
    %c0_10 = arith.constant 0 : index
    %c0_11 = arith.constant 0 : index
    %10 = vector.load %arg4[%c0_9, %c0_10, %c0_11] : memref<6x8x8xbf16, #tpu.memory_space<vmem>>, vector<1x8x8xbf16>
    %11 = vector.shape_cast %10 : vector<1x8x8xbf16> to vector<8x8xbf16>
    %cst_12 = arith.constant dense<0.000000e+00> : vector<64x8xf32>
    %12 = tpu.matmul %9, %11, %cst_12 {dimension_numbers = #tpu.dot_dimension_numbers<[1], [0], [0], [1], [0, 0, 1, 1], [], []>} : vector<64x8xbf16>, vector<8x8xbf16>, vector<64x8xf32> -> vector<64x8xf32>
    %13 = arith.addf %5, %12 : vector<64x8xf32>
    %14 = vector.extract_strided_slice %7 {offsets = [0, 1, 0], sizes = [8, 8, 8], strides = [1, 1, 1]} : vector<8x9x8xbf16> to vector<8x8x8xbf16>
    %15 = vector.shape_cast %14 : vector<8x8x8xbf16> to vector<64x8xbf16>
    %c1 = arith.constant 1 : index
    %c0_13 = arith.constant 0 : index
    %c0_14 = arith.constant 0 : index
    %16 = vector.load %arg4[%c1, %c0_13, %c0_14] : memref<6x8x8xbf16, #tpu.memory_space<vmem>>, vector<1x8x8xbf16>
    %17 = vector.shape_cast %16 : vector<1x8x8xbf16> to vector<8x8xbf16>
    %cst_15 = arith.constant dense<0.000000e+00> : vector<64x8xf32>
    %18 = tpu.matmul %15, %17, %cst_15 {dimension_numbers = #tpu.dot_dimension_numbers<[1], [0], [0], [1], [0, 0, 1, 1], [], []>} : vector<64x8xbf16>, vector<8x8xbf16>, vector<64x8xf32> -> vector<64x8xf32>
    %19 = arith.addf %13, %18 : vector<64x8xf32>
    %20 = vector.extract_strided_slice %4 {offsets = [0, 1, 0, 0], sizes = [8, 1, 9, 8], strides = [1, 1, 1, 1]} : vector<9x2x9x8xbf16> to vector<8x1x9x8xbf16>
    %21 = vector.shape_cast %20 : vector<8x1x9x8xbf16> to vector<8x9x8xbf16>
    %22 = vector.extract_strided_slice %21 {offsets = [0, 0, 0], sizes = [8, 8, 8], strides = [1, 1, 1]} : vector<8x9x8xbf16> to vector<8x8x8xbf16>
    %23 = vector.shape_cast %22 : vector<8x8x8xbf16> to vector<64x8xbf16>
    %c2 = arith.constant 2 : index
    %c0_16 = arith.constant 0 : index
    %c0_17 = arith.constant 0 : index
    %24 = vector.load %arg4[%c2, %c0_16, %c0_17] : memref<6x8x8xbf16, #tpu.memory_space<vmem>>, vector<1x8x8xbf16>
    %25 = vector.shape_cast %24 : vector<1x8x8xbf16> to vector<8x8xbf16>
    %cst_18 = arith.constant dense<0.000000e+00> : vector<64x8xf32>
    %26 = tpu.matmul %23, %25, %cst_18 {dimension_numbers = #tpu.dot_dimension_numbers<[1], [0], [0], [1], [0, 0, 1, 1], [], []>} : vector<64x8xbf16>, vector<8x8xbf16>, vector<64x8xf32> -> vector<64x8xf32>
    %27 = arith.addf %19, %26 : vector<64x8xf32>
    %28 = vector.extract_strided_slice %21 {offsets = [0, 1, 0], sizes = [8, 8, 8], strides = [1, 1, 1]} : vector<8x9x8xbf16> to vector<8x8x8xbf16>
    %29 = vector.shape_cast %28 : vector<8x8x8xbf16> to vector<64x8xbf16>
    %c3 = arith.constant 3 : index
    %c0_19 = arith.constant 0 : index
    %c0_20 = arith.constant 0 : index
    %30 = vector.load %arg4[%c3, %c0_19, %c0_20] : memref<6x8x8xbf16, #tpu.memory_space<vmem>>, vector<1x8x8xbf16>
    %31 = vector.shape_cast %30 : vector<1x8x8xbf16> to vector<8x8xbf16>
    %cst_21 = arith.constant dense<0.000000e+00> : vector<64x8xf32>
    %32 = tpu.matmul %29, %31, %cst_21 {dimension_numbers = #tpu.dot_dimension_numbers<[1], [0], [0], [1], [0, 0, 1, 1], [], []>} : vector<64x8xbf16>, vector<8x8xbf16>, vector<64x8xf32> -> vector<64x8xf32>
    %33 = arith.addf %27, %32 : vector<64x8xf32>
    %34 = vector.extract_strided_slice %4 {offsets = [1, 0, 0, 0], sizes = [8, 1, 9, 8], strides = [1, 1, 1, 1]} : vector<9x2x9x8xbf16> to vector<8x1x9x8xbf16>
    %35 = vector.shape_cast %34 : vector<8x1x9x8xbf16> to vector<8x9x8xbf16>
    %36 = vector.extract_strided_slice %35 {offsets = [0, 0, 0], sizes = [8, 8, 8], strides = [1, 1, 1]} : vector<8x9x8xbf16> to vector<8x8x8xbf16>
    %37 = vector.shape_cast %36 : vector<8x8x8xbf16> to vector<64x8xbf16>
    %c4 = arith.constant 4 : index
    %c0_22 = arith.constant 0 : index
    %c0_23 = arith.constant 0 : index
    %38 = vector.load %arg4[%c4, %c0_22, %c0_23] : memref<6x8x8xbf16, #tpu.memory_space<vmem>>, vector<1x8x8xbf16>
    %39 = vector.shape_cast %38 : vector<1x8x8xbf16> to vector<8x8xbf16>
    %cst_24 = arith.constant dense<0.000000e+00> : vector<64x8xf32>
    %40 = tpu.matmul %37, %39, %cst_24 {dimension_numbers = #tpu.dot_dimension_numbers<[1], [0], [0], [1], [0, 0, 1, 1], [], []>} : vector<64x8xbf16>, vector<8x8xbf16>, vector<64x8xf32> -> vector<64x8xf32>
    %41 = arith.addf %33, %40 : vector<64x8xf32>
    %42 = vector.extract_strided_slice %35 {offsets = [0, 1, 0], sizes = [8, 8, 8], strides = [1, 1, 1]} : vector<8x9x8xbf16> to vector<8x8x8xbf16>
    %43 = vector.shape_cast %42 : vector<8x8x8xbf16> to vector<64x8xbf16>
    %c5 = arith.constant 5 : index
    %c0_25 = arith.constant 0 : index
    %c0_26 = arith.constant 0 : index
    %44 = vector.load %arg4[%c5, %c0_25, %c0_26] : memref<6x8x8xbf16, #tpu.memory_space<vmem>>, vector<1x8x8xbf16>
    %45 = vector.shape_cast %44 : vector<1x8x8xbf16> to vector<8x8xbf16>
    %cst_27 = arith.constant dense<0.000000e+00> : vector<64x8xf32>
    %46 = tpu.matmul %43, %45, %cst_27 {dimension_numbers = #tpu.dot_dimension_numbers<[1], [0], [0], [1], [0, 0, 1, 1], [], []>} : vector<64x8xbf16>, vector<8x8xbf16>, vector<64x8xf32> -> vector<64x8xf32>
    %47 = arith.addf %41, %46 : vector<64x8xf32>
    %c0_28 = arith.constant 0 : index
    %c0_29 = arith.constant 0 : index
    %48 = vector.load %arg5[%c0_28, %c0_29] : memref<1x8xf32, #tpu.memory_space<vmem>>, vector<1x8xf32>
    %49 = vector.broadcast %48 : vector<1x8xf32> to vector<64x8xf32>
    %50 = arith.addf %47, %49 : vector<64x8xf32>
    %cst_30 = arith.constant 0.000000e+00 : f32
    %51 = vector.broadcast %cst_30 : f32 to vector<64x8xf32>
    %52 = arith.maximumf %50, %51 : vector<64x8xf32>
    %53 = vector.shape_cast %52 : vector<64x8xf32> to vector<1x8x8x8xf32>
    %c0_31 = arith.constant 0 : index
    %c0_32 = arith.constant 0 : index
    %c0_33 = arith.constant 0 : index
    %c0_34 = arith.constant 0 : index
    %54 = vector.load %arg6[%c0_31, %c0_32, %c0_33, %c0_34] : memref<1x8x8x8xf32, #tpu.memory_space<vmem>>, vector<1x8x8x8xf32>
    tpu.vector_store %arg6[%c0_31, %c0_32, %c0_33, %c0_34], %53 {strides = array<i32>} : memref<1x8x8x8xf32, #tpu.memory_space<vmem>>, vector<1x8x8x8xf32>,
    return
  }
  func.func @transform_0(%arg0: i32, %arg1: i32) -> (i32, i32, i32, i32, i32) {
    %c0_i32 = arith.constant 0 : i32
    %c0_i32_0 = arith.constant 0 : i32
    %c0_i32_1 = arith.constant 0 : i32
    %c0_i32_2 = arith.constant 0 : i32
    return %arg0, %arg1, %c0_i32, %c0_i32_0, %c0_i32_1 : i32, i32, i32, i32, i32
  }
  func.func @transform_1(%arg0: i32, %arg1: i32) -> (i32, i32, i32, i32, i32) {
    %c1_i32 = arith.constant 1 : i32
    %0 = arith.addi %arg1, %c1_i32 : i32
    %c8_i32 = arith.constant 8 : i32
    %1 = arith.muli %0, %c8_i32 : i32
    %c0_i32 = arith.constant 0 : i32
    %c0_i32_0 = arith.constant 0 : i32
    %c0_i32_1 = arith.constant 0 : i32
    %c0_i32_2 = arith.constant 0 : i32
    return %arg0, %1, %c0_i32, %c0_i32_0, %c0_i32_1 : i32, i32, i32, i32, i32
  }
  func.func @transform_2(%arg0: i32, %arg1: i32) -> (i32, i32, i32) {
    %c0_i32 = arith.constant 0 : i32
    %c0_i32_0 = arith.constant 0 : i32
    %c0_i32_1 = arith.constant 0 : i32
    %c0_i32_2 = arith.constant 0 : i32
    return %c0_i32, %c0_i32_0, %c0_i32_1 : i32, i32, i32
  }
  func.func @transform_3(%arg0: i32, %arg1: i32) -> (i32, i32) {
    %c0_i32 = arith.constant 0 : i32
    %c0_i32_0 = arith.constant 0 : i32
    %c0_i32_1 = arith.constant 0 : i32
    return %c0_i32, %c0_i32_0 : i32, i32
  }
  func.func @transform_4(%arg0: i32, %arg1: i32) -> (i32, i32, i32, i32) {
    %c0_i32 = arith.constant 0 : i32
    %c0_i32_0 = arith.constant 0 : i32
    %c0_i32_1 = arith.constant 0 : i32
    return %arg0, %arg1, %c0_i32, %c0_i32_0 : i32, i32, i32, i32
  }
}

</mosaic_0001>

<bundles_post_ra>
// kernel: conv_layer_forward.1
= control target key start
LH: loop header
LB: loop body
LE: loop exit
PB: predicated region body
PF: predicated region fallthrough
CT: control target
= control target key end

     0   :  { %s1627_s15 = smov 0   ;;  %s1629_s16 = smov 0   ;;  %s1942_s0 = inlined_call_operand.vmem [shape: bf16[2,9,2,9,8], index: 0, kind: input, shape index: {}, may-alias: {0,1}]   ;;  %s1943_s1 = inlined_call_operand.vmem [shape: bf16[2,9,2,9,8], index: 1, kind: input, shape index: {}, may-alias: {0,1}]   ;;  %s1944_s2 = inlined_call_operand.vmem [shape: bf16[6,8,8], index: 2, kind: input, shape index: {}]   ;;  %s1945_s3 = inlined_call_operand.vmem [shape: f32[1,8], index: 3, kind: input, shape index: {}]   ;;  %s1946_s4 = inlined_call_operand.vmem [shape: f32[2,8,8,8], index: 4, kind: output, shape index: {}]  }
   0x1   :  { %s1631_s17 = smov 0  }
   0x2 LB: > { %s26_s18 = sadd.s32 1, %s1596_s16  ;;  %p1340_p0 = scmp.ge.s32.totalorder %s1600_s17, 1  ;;  %s1600_s17 = sphi %s1631_s17, %s14_s17   ;;  %s1596_s16 = sphi %s1629_s16, %s1950_s16   ;;  %s1592_s15 = sphi %s1627_s15, %s1949_s15  }
   0x3   : > { %p28_p1 = scmp.ge.s32.totalorder %s26_s18, 2  ;;  %p220_p2 = scmp.lt.s32.totalorder %s1600_s17, 3 }
   0x5   : > { %s1952_s18 = smov (%p28_p1, %s26_s18), 0  ;;  %p221_p3 = pnand %p1340_p0, %p220_p2 }
   0x6   : > { %v1345_v0 = vld [vmem:[%s1944_s2 + $0x4] sm:$0xf] (!%p221_p3)  ;;  %vm496_vm0 = vcmask (!%p221_p3), 1043456   ;;  %v1371_v1 = vld [vmem:[%s1944_s2 + $0xc] sm:$0xf] (!%p221_p3)  ;;  %p279_p4 = scmp.lt.s32.totalorder (!%p221_p3), %s1592_s15, 1 }
   0x7   : > { %224 = sbr.rel (%p221_p3) target bundleno = 319 (0x13f), region = 36  ;;  %1534 = vmatprep.subr.msk.bf16.mxu1 (!%p221_p3), %vm496_vm0, %v1345_v0  ;;  %1537 = vmatprep.subr.msk.bf16.mxu0 (!%p221_p3), %vm496_vm0, %v1371_v1  ;;  %v498_v2 = vsel (!%p221_p3), %vm496_vm0, %v1345_v0, 0  ;;  %v914_v3 = vsel (!%p221_p3), %vm496_vm0, %v1371_v1, 0  ;;  %v353_v4 = vld [vmem:[%s1944_s2] sm:$0xf] (!%p221_p3)  ;;  %vm483_vm3 = vcmask (!%p221_p3), 64512  }
   0x8   : > { %1435 = vmatpush3.bf16.msra.mxu1 (!%p221_p3), %v498_v2  ;;  %1465 = vmatpush3.bf16.msra.mxu0 (!%p221_p3), %v914_v3  ;;  %v1663_v5 = vld [vmem:[%s1944_s2 + $0x10] sm:$0xf] (!%p221_p3)  ;;  %vm354_vm1 = vsmask.f32 (!%p221_p3), 3328  ;;  %vm355_vm2 = vsmask.f32 (!%p221_p3), 7440 }
   0x9   : > { %1535 = vmatprep.subr.msk.bf16.mxu1 (!%p221_p3), %vm496_vm0, %v353_v4  ;;  %1538 = vmatprep.subr.msk.bf16.mxu0 (!%p221_p3), %vm496_vm0, %v1663_v5  ;;  %vm1706_vm4 = vmor (!%p221_p3), %vm354_vm1, %vm355_vm2  ;;  %v598_v59 = vsel (!%p221_p3), %vm496_vm0, %v353_v4, 0 }
   0xe   : > { %s1954_s15 = smov (!%p279_p4, %s1592_s15), 1 }
   0xf   : > { %s1540_s27 = smul.u32 144, %s1954_s15  ;;  %s1403_s19 = sshll.u32 %s1954_s15, 6 }
  0x10   : > { %s1915_s22 = scalar_lea.vmem %s1946_s4, %s1403_s19 }
  0x11   : > { %s1674_s30 = scalar_lea.vmem %s1942_s0, %s1540_s27  ;;  %s1402_s9 = sadd.s32 128, %s1540_s27 }
  0x12   : > { %v1677_v6 = vld [vmem:[%s1674_s30] sm:$0xf]  ;;  %v320_v7 = vld [vmem:[%s1674_s30 + $0x4] sm:$0x1]  ;;  %v1681_v8 = vld [vmem:[%s1674_s30 + $0x10] sm:$0xf]  ;;  %s305_s12 = scalar_lea.vmem %s1943_s1, %s1402_s9 }
  0x13   : > { %v324_v9 = vld [vmem:[%s1674_s30 + $0x14] sm:$0x1]  ;;  %v1685_v10 = vld [vmem:[%s1674_s30 + $0x20] sm:$0xf]  ;;  %v328_v11 = vld [vmem:[%s1674_s30 + $0x24] sm:$0x1] }
  0x14   : > { %v1689_v12 = vld [vmem:[%s1674_s30 + $0x30] sm:$0xf]  ;;  %v358_v13 = vshrl.u32 %v1677_v6, 16  ;;  %v361_v14 = vshll.u32 %v1677_v6, 16  ;;  %v367_v15 = vshll.u32 %v320_v7, 16  ;;  %v372_v16 = vshrl.u32 %v1681_v8, 16 }
  0x15   : > { %v332_v17 = vld [vmem:[%s1674_s30 + $0x34] sm:$0x1]  ;;  %v375_v18 = vshll.u32 %v1681_v8, 16  ;;  %v381_v19 = vshll.u32 %v324_v9, 16  ;;  %v386_v20 = vshrl.u32 %v1685_v10, 16  ;;  %v389_v21 = vshll.u32 %v1685_v10, 16 }
  0x16   : > { %v1699_v22 = vld [vmem:[%s1674_s30 + $0x40] sm:$0xf]  ;;  %v360_v23 = vrot.slane %v358_v13, 4  ;;  %v363_v24 = vrot.slane %v361_v14, 5  ;;  %v369_v25 = vrot.slane %v367_v15, 5  ;;  %v374_v26 = vrot.slane %v372_v16, 4 }
  0x17   : > { %v377_v27 = vrot.slane %v375_v18, 5  ;;  %v383_v28 = vrot.slane %v381_v19, 5  ;;  %v388_v29 = vrot.slane %v386_v20, 4  ;;  %v391_v30 = vrot.slane %v389_v21, 5  ;;  %v336_v35 = vld [vmem:[%s1674_s30 + $0x44] sm:$0x1] }
  0x18   : > { %v364_v31 = vor.u32 %v363_v24, %v360_v23  ;;  %v395_v32 = vshll.u32 %v328_v11, 16  ;;  %v400_v33 = vshrl.u32 %v1689_v12, 16  ;;  %v403_v34 = vshll.u32 %v1689_v12, 16  ;;  %v1712_v45 = vld [vmem:[%s1674_s30 + $0x8] sm:$0xf] }
  0x19   : > { %v378_v37 = vor.u32 %v377_v27, %v374_v26  ;;  %v392_v38 = vor.u32 %v391_v30, %v388_v29  ;;  %v409_v39 = vshll.u32 %v332_v17, 16  ;;  %v414_v40 = vshrl.u32 %v1699_v22, 16  ;;  %v322_v54 = vld [vmem:[%s1674_s30 + $0xc] sm:$0x1]  ;;  %v1723_v56 = vld [vmem:[%s1674_s30 + $0x18] sm:$0xf] }
  0x1a   : > { %v365_v41 = vrot.slane %v364_v31, 4  ;;  %v397_v42 = vrot.slane %v395_v32, 5  ;;  %v402_v43 = vrot.slane %v400_v33, 4  ;;  %v405_v44 = vrot.slane %v403_v34, 5  ;;  %v326_v0 = vld [vmem:[%s1674_s30 + $0x1c] sm:$0x1] }
  0x1b   : > { %v379_v46 = vrot.slane %v378_v37, 4  ;;  %v393_v47 = vrot.slane %v392_v38, 4  ;;  %v411_v48 = vrot.slane %v409_v39, 5  ;;  %v416_v49 = vrot.slane %v414_v40, 4  ;;  %v1735_v9 = vld [vmem:[%s1674_s30 + $0x28] sm:$0xf] }
  0x1c   : > { %v370_v50 = vsel %vm1706_vm4, %v365_v41, %v369_v25  ;;  %v406_v51 = vor.u32 %v405_v44, %v402_v43  ;;  %v417_v52 = vshll.u32 %v1699_v22, 16  ;;  %v423_v53 = vshll.u32 %v336_v35, 16  ;;  %v330_v15 = vld [vmem:[%s1674_s30 + $0x2c] sm:$0x1]  ;;  %v1748_v20 = vld [vmem:[%s1674_s30 + $0x38] sm:$0xf] }
  0x1d   : > { %v1720_v55 = vsel %vm1706_vm4, %v379_v46, %v383_v28  ;;  %v776_v57 = vshrl.u32 %v1712_v45, 16  ;;  %v779_v58 = vshll.u32 %v1712_v45, 16  ;;  %v1730_v60 = vsel %vm1706_vm4, %v393_v47, %v397_v42  ;;  %v1753_v21 = vld [vmem:[%s1944_s2 + $0x8] sm:$0xf]  ;;  %v334_v26 = vld [vmem:[%s1674_s30 + $0x3c] sm:$0x1] }
  0x1e   : > { %v407_v61 = vrot.slane %v406_v51, 4  ;;  %v419_v62 = vrot.slane %v417_v52, 5  ;;  %v1346_v63 = vcombine.low %v370_v50, %v1720_v55  ;;  %v425_v1 = vrot.slane %v423_v53, 5  ;;  %v1764_v32 = vld [vmem:[%s1674_s30 + $0x50] sm:$0xf] }
  0x1f   : > { %v778_v2 = vrot.slane %v776_v57, 4  ;;  %v781_v3 = vrot.slane %v779_v58, 5  ;;  %v785_v7 = vshll.u32 %v322_v54, 16  ;;  %v790_v13 = vshrl.u32 %v1723_v56, 16  ;;  %v340_v38 = vld [vmem:[%s1674_s30 + $0x54] sm:$0x1] }
  0x20   : > { %v1739_v4 = vsel %vm1706_vm4, %v407_v61, %v411_v48  ;;  %v420_v11 = vor.u32 %v419_v62, %v416_v49  ;;  %1436 = vmatprep.mubr.msk.bf16.mxu1 %vm483_vm3, %v1346_v63  ;;  %v793_v14 = vshll.u32 %v1723_v56, 16  ;;  %v799_v19 = vshll.u32 %v326_v0, 16  ;;  %v1775_v42 = vld [vmem:[%s1674_s30 + $0x48] sm:$0xf]  ;;  %v338_v52 = vld [vmem:[%s1674_s30 + $0x4c] sm:$0x1] }
  0x21   : > { %v1347_v16 = vcombine.low %v1730_v60, %v1739_v4  ;;  %v782_v17 = vor.u32 %v781_v3, %v778_v2  ;;  %v787_v18 = vrot.slane %v785_v7, 5  ;;  %v792_v24 = vrot.slane %v790_v13, 4  ;;  %v1786_v58 = vld [vmem:[%s1674_s30 + $0x58] sm:$0xf]  ;;  %v1792_v13 = vld [vmem:[%s1674_s30 + $0x60] sm:$0xf] }
  0x22   : > { %v421_v23 = vrot.slane %v420_v11, 4  ;;  %v795_v25 = vrot.slane %v793_v14, 5  ;;  %v804_v27 = vshrl.u32 %v1735_v9, 16  ;;  %v807_v29 = vshll.u32 %v1735_v9, 16 }
  0x23   : > { %v783_v28 = vrot.slane %v782_v17, 4  ;;  %1437 = vmatmul.mubr.msk.bf16.vlgmr.msra.gmra.mrb[0].mxu1 %vm483_vm3, %v1347_v16  ;;  %v813_v30 = vshll.u32 %v330_v15, 16  ;;  %v1761_v31 = vsel %vm496_vm0, %v1663_v5, 0  ;;  %v801_v34 = vrot.slane %v799_v19, 5 }
  0x24   : > { %v796_v33 = vor.u32 %v795_v25, %v792_v24  ;;  %1445 = vmatpush3.bf16.msra.mxu1 %v598_v59  ;;  %v806_v35 = vrot.slane %v804_v27, 4  ;;  %v818_v37 = vshrl.u32 %v1748_v20, 16  ;;  %v1770_v39 = vsel %vm1706_vm4, %v421_v23, %v425_v1  ;;  %v342_v1 = vld [vmem:[%s1674_s30 + $0x5c] sm:$0x1] }
  0x25   : > { %v788_v40 = vsel %vm1706_vm4, %v783_v28, %v787_v18  ;;  %v809_v41 = vrot.slane %v807_v29, 5  ;;  %v815_v5 = vrot.slane %v813_v30, 5  ;;  %1536 = vmatprep.subr.msk.bf16.mxu1 %vm496_vm0, %v1753_v21  ;;  %v821_v46 = vshll.u32 %v1748_v20, 16  ;;  %v344_v28 = vld [vmem:[%s1674_s30 + $0x64] sm:$0x1] }
  0x26   : > { %v797_v43 = vrot.slane %v796_v33, 4  ;;  %v820_v44 = vrot.slane %v818_v37, 4  ;;  %v827_v47 = vshll.u32 %v334_v26, 16  ;;  %v428_v49 = vshrl.u32 %v1764_v32, 16  ;;  %v1804_v37 = vld [vmem:[%s1674_s30 + $0x70] sm:$0xf] }
  0x27   : > { %v810_v48 = vor.u32 %v809_v41, %v806_v35  ;;  %v431_v50 = vshll.u32 %v1764_v32, 16  ;;  %v437_v51 = vshll.u32 %v340_v38, 16  ;;  %v823_v54 = vrot.slane %v821_v46, 5  ;;  %v348_v38 = vld [vmem:[%s1674_s30 + $0x74] sm:$0x1] }
  0x28   : > { %v802_v53 = vsel %vm1706_vm4, %v797_v43, %v801_v34  ;;  %v829_v57 = vrot.slane %v827_v47, 5  ;;  %v832_v59 = vshrl.u32 %v1775_v42, 16  ;;  %v430_v63 = vrot.slane %v428_v49, 4 }
  0x29   : > { %v1372_v61 = vcombine.low %v788_v40, %v802_v53  ;;  %v811_v62 = vrot.slane %v810_v48, 4  ;;  %v433_v0 = vrot.slane %v431_v50, 5  ;;  %v824_v2 = vor.u32 %v823_v54, %v820_v44  ;;  %v1813_v44 = vld [vmem:[%s1674_s30 + $0x68] sm:$0xf]  ;;  %v1820_v50 = vld [vmem:[%s1944_s2 + $0x14] sm:$0xf] }
  0x2a   : > { %v439_v3 = vrot.slane %v437_v51, 5  ;;  %v834_v7 = vrot.slane %v832_v59, 4  ;;  %v835_v11 = vshll.u32 %v1775_v42, 16  ;;  %v841_v16 = vshll.u32 %v338_v52, 16 }
  0x2b   : > { %1466 = vmatprep.mubr.msk.bf16.mxu0 %vm483_vm3, %v1372_v61  ;;  %v816_v14 = vsel %vm1706_vm4, %v811_v62, %v815_v5  ;;  %v434_v15 = vor.u32 %v433_v0, %v430_v63  ;;  %v846_v17 = vshrl.u32 %v1786_v58, 16  ;;  %v825_v18 = vrot.slane %v824_v2, 4  ;;  %v1831_v63 = vld [vmem:[%s1674_s30 + $0x78] sm:$0xf] }
  0x2c   : > { %v837_v19 = vrot.slane %v835_v11, 5  ;;  %v849_v23 = vshll.u32 %v1786_v58, 16  ;;  %v855_v24 = vshll.u32 %v342_v1, 16  ;;  %v843_v26 = vrot.slane %v841_v16, 5  ;;  %v350_v11 = vld [vmem:[%s1674_s30 + $0x7c] sm:$0x1] }
  0x2d   : > { %v435_v25 = vrot.slane %v434_v15, 4  ;;  %v848_v27 = vrot.slane %v846_v17, 4  ;;  %v442_v29 = vshrl.u32 %v1792_v13, 16  ;;  %v830_v30 = vsel %vm1706_vm4, %v825_v18, %v829_v57  ;;  %v346_v57 = vld [vmem:[%s1674_s30 + $0x6c] sm:$0x1] }
  0x2e   : > { %v838_v33 = vor.u32 %v837_v19, %v834_v7  ;;  %v851_v34 = vrot.slane %v849_v23, 5  ;;  %v857_v35 = vrot.slane %v855_v24, 5  ;;  %v1373_v40 = vcombine.low %v816_v14, %v830_v30 }
  0x2f   : > { %v1809_v41 = vsel %vm1706_vm4, %v435_v25, %v439_v3  ;;  %v444_v5 = vrot.slane %v442_v29, 4  ;;  %v445_v43 = vshll.u32 %v1792_v13, 16  ;;  %v451_v49 = vshll.u32 %v344_v28, 16 }
  0x30   : > { %v1348_v46 = vcombine.low %v1770_v39, %v1809_v41  ;;  %v839_v47 = vrot.slane %v838_v33, 4  ;;  %v852_v48 = vor.u32 %v851_v34, %v848_v27  ;;  %1467 = vmatmul.mubr.msk.bf16.vlgmr.msra.gmra.mrb[0].mxu0 %vm483_vm3, %v1373_v40  ;;  %v456_v52 = vshrl.u32 %v1804_v37, 16 }
  0x31   : > { %v447_v51 = vrot.slane %v445_v43, 5  ;;  %v459_v53 = vshll.u32 %v1804_v37, 16  ;;  %v465_v54 = vshll.u32 %v348_v38, 16  ;;  %1475 = vmatpush3.bf16.msra.mxu0 %v1761_v31  ;;  %v453_v62 = vrot.slane %v451_v49, 5 }
  0x32   : > { %1440 = vmatprep.mubr.msk.bf16.mxu1 %vm483_vm3, %v1348_v46  ;;  %v844_v59 = vsel %vm1706_vm4, %v839_v47, %v843_v26  ;;  %v853_v61 = vrot.slane %v852_v48, 4  ;;  %v860_v0 = vshrl.u32 %v1813_v44, 16  ;;  %v458_v2 = vrot.slane %v456_v52, 4  ;;  %1539 = vmatprep.subr.msk.bf16.mxu0 %vm496_vm0, %v1820_v50 }
  0x33   : > { %v448_v1 = vor.u32 %v447_v51, %v444_v5  ;;  %v461_v3 = vrot.slane %v459_v53, 5  ;;  %v467_v7 = vrot.slane %v465_v54, 5  ;;  %v863_v15 = vshll.u32 %v1813_v44, 16 }
  0x34   : > { %v858_v31 = vsel %vm1706_vm4, %v853_v61, %v857_v35  ;;  %v862_v14 = vrot.slane %v860_v0, 4  ;;  %v869_v16 = vshll.u32 %v346_v57, 16  ;;  %v874_v23 = vshrl.u32 %v1831_v63, 16  ;;  %v352_v0 = vld [vmem:[%s305_s12 + $0x4] sm:$0x1] }
  0x35   : > { %v1374_v17 = vcombine.low %v844_v59, %v858_v31  ;;  %v449_v18 = vrot.slane %v448_v1, 4  ;;  %v462_v19 = vor.u32 %v461_v3, %v458_v2  ;;  %v865_v24 = vrot.slane %v863_v15, 5  ;;  %v351_v59 = vld [vmem:[%s305_s12] sm:$0xf] }
  0x36   : > { %v877_v25 = vshll.u32 %v1831_v63, 16  ;;  %v883_v26 = vshll.u32 %v350_v11, 16  ;;  %v876_v29 = vrot.slane %v874_v23, 4  ;;  %v871_v33 = vrot.slane %v869_v16, 5 }
  0x37   : > { %1470 = vmatprep.mubr.msk.bf16.mxu0 %vm483_vm3, %v1374_v17  ;;  %v454_v27 = vsel %vm1706_vm4, %v449_v18, %v453_v62  ;;  %v463_v28 = vrot.slane %v462_v19, 4  ;;  %v866_v30 = vor.u32 %v865_v24, %v862_v14  ;;  %v1354_v38 = vcombine.low %v1677_v6, %v1681_v8 }
  0x38   : > { %v879_v34 = vrot.slane %v877_v25, 5  ;;  %v885_v46 = vrot.slane %v883_v26, 5  ;;  %v1381_v51 = vcombine.low %v1681_v8, %v1685_v10  ;;  %v1355_v52 = vcombine.low %v1685_v10, %v1689_v12 }
  0x39   : > { %v468_v35 = vsel %vm1706_vm4, %v463_v28, %v467_v7  ;;  %v867_v5 = vrot.slane %v866_v30, 4  ;;  %v1356_v53 = vcombine.low %v1699_v22, %v1764_v32  ;;  %v700_v54 = vsel %vm496_vm0, %v1753_v21, 0 }
  0x3a   : > { %v1349_v40 = vcombine.low %v454_v27, %v468_v35  ;;  %v880_v43 = vor.u32 %v879_v34, %v876_v29  ;;  %v1382_v8 = vcombine.low %v1689_v12, %v1699_v22  ;;  %v1383_v10 = vcombine.low %v1764_v32, %v1792_v13 }
  0x3b   : > { %v872_v47 = vsel %vm1706_vm4, %v867_v5, %v871_v33  ;;  %v1119_v21 = vsel %vm496_vm0, %v1820_v50, 0  ;;  %v1357_v57 = vcombine.low %v1792_v13, %v1804_v37  ;;  %v1363_v12 = vcombine.low %v1712_v45, %v1723_v56 }
  0x3c   : > { %1441 = vmatmul.mubr.msk.bf16.gmra.mrb[4].mxu1 %vm483_vm3, %v1349_v40  ;;  %v881_v48 = vrot.slane %v880_v43, 4  ;;  %v1086_v22 = vshrl.u32 %v351_v59, 16  ;;  %v1089_v32 = vshll.u32 %v351_v59, 16  ;;  %v1384_v61 = vcombine.low %v1804_v37, %v351_v59 }
  0x3d   : > { %1446 = vmatprep.mubr.msk.bf16.mxu1 %vm483_vm3, %v1354_v38  ;;  %v1390_v13 = vcombine.low %v1720_v55, %v1730_v60  ;;  %v1364_v45 = vcombine.low %v1735_v9, %v1748_v20  ;;  %v1365_v56 = vcombine.low %v1775_v42, %v1786_v58  ;;  %v1095_v1 = vshll.u32 %v352_v0, 16 }
  0x3e   : > { %v886_v49 = vsel %vm1706_vm4, %v881_v48, %v885_v46  ;;  %v1088_v50 = vrot.slane %v1086_v22, 4  ;;  %v1091_v62 = vrot.slane %v1089_v32, 5  ;;  %v1391_v55 = vcombine.low %v1739_v4, %v1770_v39 }
  0x3f   : > { %v1375_v6 = vcombine.low %v872_v47, %v886_v49  ;;  %v1097_v60 = vrot.slane %v1095_v1, 5  ;;  %v1392_v9 = vcombine.low %v1809_v41, %v454_v27  ;;  %v1366_v2 = vcombine.low %v1813_v44, %v1831_v63  ;;  %v1398_v44 = vld [vmem:[%s1945_s3] ss:$0 sm:$0xff] }
  0x40   : > { %v1092_v37 = vor.u32 %v1091_v62, %v1088_v50 }
  0x41   : > { %1471 = vmatmul.mubr.msk.bf16.gmra.mrb[4].mxu0 %vm483_vm3, %v1375_v6 }
  0x42   : > { %1476 = vmatprep.mubr.msk.bf16.mxu0 %vm483_vm3, %v1381_v51  ;;  %v1093_v20 = vrot.slane %v1092_v37, 4 }
  0x44   : > { %1447 = vmatmul.mubr.msk.bf16.vlgmr.msra.gmra.mrb[0].mxu1 %vm483_vm3, %v1355_v52  ;;  %v1098_v42 = vsel %vm1706_vm4, %v1093_v20, %v1097_v60 }
  0x45   : > { %1455 = vmatpush3.bf16.msra.mxu1 %v700_v54  ;;  %1450 = vmatprep.mubr.msk.bf16.mxu1 %vm483_vm3, %v1356_v53  ;;  %v1393_v4 = vcombine.low %v468_v35, %v1098_v42 }
  0x49   : > { %1477 = vmatmul.mubr.msk.bf16.vlgmr.msra.gmra.mrb[0].mxu0 %vm483_vm3, %v1382_v8 }
  0x4a   : > { %1485 = vmatpush3.bf16.msra.mxu0 %v1119_v21  ;;  %1480 = vmatprep.mubr.msk.bf16.mxu0 %vm483_vm3, %v1383_v10 }
  0x4c   : > { %1451 = vmatmul.mubr.msk.bf16.gmra.mrb[4].mxu1 %vm483_vm3, %v1357_v57 }
  0x4d   : > { %1456 = vmatprep.mubr.msk.bf16.mxu1 %vm483_vm3, %v1363_v12 }
  0x51   : > { %1481 = vmatmul.mubr.msk.bf16.gmra.mrb[4].mxu0 %vm483_vm3, %v1384_v61 }
  0x52   : > { %1486 = vmatprep.mubr.msk.bf16.mxu0 %vm483_vm3, %v1390_v13 }
  0x54   : > { %1457 = vmatmul.mubr.msk.bf16.vlgmr.msra.gmra.mrb[0].mxu1 %vm483_vm3, %v1364_v45 }
  0x55   : > { %1460 = vmatprep.mubr.msk.bf16.mxu1 %vm483_vm3, %v1365_v56 }
  0x59   : > { %1487 = vmatmul.mubr.msk.bf16.vlgmr.msra.gmra.mrb[0].mxu0 %vm483_vm3, %v1391_v55 }
  0x5a   : > { %1490 = vmatprep.mubr.msk.bf16.mxu0 %vm483_vm3, %v1392_v9 }
  0x5c   : > { %1461 = vmatmul.mubr.msk.bf16.gmra.mrb[4].mxu1 %vm483_vm3, %v1366_v2 }
  0x61   : > { %1491 = vmatmul.mubr.msk.bf16.gmra.mrb[4].mxu0 %vm483_vm3, %v1393_v4 }
 0x127   : > { %v1458_v39 = vpop.f32.mrb[0].mxu1 }
 0x128   : > { %v736_v58 = vpop.f32.mrb[1].mxu1 }
 0x129   : > { %v1459_v3 = vpop.f32.mrb[2].mxu1 }
 0x12a   : > { %v739_v41 = vpop.f32.mrb[3].mxu1 }
 0x12c   : > { %v1488_v7 = vpop.f32.mrb[0].mxu0 }
 0x12d   : > { %v1494_v63 = vadd.f32 %v1488_v7, %v1458_v39  ;;  %v1155_v11 = vpop.f32.mrb[1].mxu0 }
 0x12e   : > { %v1495_v31 = vadd.f32 %v1155_v11, %v736_v58  ;;  %v1489_v36 = vpop.f32.mrb[2].mxu0 }
 0x12f   : > { %v1203_v14 = vadd.f32 %v1494_v63, %v1398_v44  ;;  %v1496_v15 = vadd.f32 %v1489_v36, %v1459_v3  ;;  %v1158_v16 = vpop.f32.mrb[3].mxu0  ;;  %v1462_v17 = vpop.f32.mrb[4].mxu1 }
 0x130   : > { %v1201_v18 = vadd.f32 %v1495_v31, %v1398_v44  ;;  %v1497_v19 = vadd.f32 %v1158_v16, %v739_v41  ;;  %v752_v23 = vpop.f32.mrb[5].mxu1 }
 0x131   : > { %v1211_v24 = vmax.f32 %v1203_v14, 0.0  ;;  %v1204_v25 = vadd.f32 %v1496_v15, %v1398_v44  ;;  %v1463_v26 = vpop.f32.mrb[6].mxu1 }
 0x132   : > { %v1209_v27 = vmax.f32 %v1201_v18, 0.0  ;;  %v1202_v28 = vadd.f32 %v1497_v19, %v1398_v44  ;;  %v755_v29 = vpop.f32.mrb[7].mxu1 }
 0x133   : > { %1219 = vst.msk [vmem:[%s1915_s22 + $0x10] sm:$0xff] %vm483_vm3, %v1211_v24  ;;  %v1212_v30 = vmax.f32 %v1204_v25, 0.0 }
 0x134   : > { %1217 = vst.msk [vmem:[%s1915_s22] sm:$0xff] %vm483_vm3, %v1209_v27  ;;  %v1210_v33 = vmax.f32 %v1202_v28, 0.0  ;;  %v1492_v34 = vpop.f32.mrb[4].mxu0 }
 0x135   : > { %1220 = vst.msk [vmem:[%s1915_s22 + $0x18] sm:$0xff] %vm483_vm3, %v1212_v30  ;;  %v1498_v35 = vadd.f32 %v1492_v34, %v1462_v17  ;;  %v1171_v38 = vpop.f32.mrb[5].mxu0 }
 0x136   : > { %1218 = vst.msk [vmem:[%s1915_s22 + $0x8] sm:$0xff] %vm483_vm3, %v1210_v33  ;;  %v1499_v40 = vadd.f32 %v1171_v38, %v752_v23  ;;  %v1493_v5 = vpop.f32.mrb[6].mxu0 }
 0x137   : > { %v1207_v43 = vadd.f32 %v1498_v35, %v1398_v44  ;;  %v1500_v46 = vadd.f32 %v1493_v5, %v1463_v26  ;;  %v1174_v47 = vpop.f32.mrb[7].mxu0 }
 0x138   : > { %v1205_v48 = vadd.f32 %v1499_v40, %v1398_v44  ;;  %v1501_v49 = vadd.f32 %v1174_v47, %v755_v29 }
 0x139   : > { %v1215_v51 = vmax.f32 %v1207_v43, 0.0  ;;  %v1208_v6 = vadd.f32 %v1500_v46, %v1398_v44 }
 0x13a   : > { %v1213_v52 = vmax.f32 %v1205_v48, 0.0  ;;  %v1206_v53 = vadd.f32 %v1501_v49, %v1398_v44 }
 0x13b   : > { %1223 = vst.msk [vmem:[%s1915_s22 + $0x30] sm:$0xff] %vm483_vm3, %v1215_v51  ;;  %v1216_v54 = vmax.f32 %v1208_v6, 0.0 }
 0x13c   : > { %1221 = vst.msk [vmem:[%s1915_s22 + $0x20] sm:$0xff] %vm483_vm3, %v1213_v52  ;;  %v1214_v8 = vmax.f32 %v1206_v53, 0.0 }
 0x13d   : > { %1224 = vst.msk [vmem:[%s1915_s22 + $0x38] sm:$0xff] %vm483_vm3, %v1216_v54 }
 0x13e   : > { %1222 = vst.msk [vmem:[%s1915_s22 + $0x28] sm:$0xff] %vm483_vm3, %v1214_v8 }
 0x13f PF: > { %s14_s17 = sadd.s32 1, %s1600_s17   ;;  %s1949_s15 = smov %s1596_s16 }
 0x140   : > { %p11_p5 = scmp.ge.s32.totalorder %s14_s17, 4   ;;  %s1950_s16 = smov %s1952_s18 }
 0x142   :  { %13 = sbr.rel (!%p11_p5) target bundleno = 2 (0x2), region = 74 }

</bundles_post_ra>
